<compile_context>
chip_gen: v7x
topology: tpu7x:2x2x1
jax: 0.10.0
libtpu: 0.0.40
codegen_flags: <defaults>
</compile_context>

<pallas_src>
import jax
import jax.numpy as jnp
from jax.experimental import pallas as pl
from jax.experimental.pallas import tpu as pltpu


def _round_up(x, m):
    return (x + m - 1) // m * m


def _make_dense_kernel(n_terms):
    """Kernel over: x_0..x_{n-1}, Wt_0..Wt_{n-1}, b_sum, out."""

    def kernel(*refs):
        x_refs = refs[:n_terms]
        w_refs = refs[n_terms:2 * n_terms]
        b_ref = refs[2 * n_terms]
        o_ref = refs[2 * n_terms + 1]
        # Per-term MXU dots, f32 accumulation; bias folded into the epilogue.
        acc = jnp.dot(x_refs[0][...], w_refs[0][...],
                      preferred_element_type=jnp.float32)
        for xr, wr in zip(x_refs[1:], w_refs[1:]):
            acc = acc + jnp.dot(xr[...], wr[...],
                                preferred_element_type=jnp.float32)
        o_ref[...] = (acc + b_ref[...]).astype(o_ref.dtype)

    return kernel


def prepare_dense_params(Ws, *, compute_dtype=jnp.float32):
    """One-time parameter preparation (hoisted out of the per-call path).

    Ws : list of either None or (weight (H, d_i), bias (H,) or None) tuples,
         mirroring a list of nn.Linear modules (PyTorch weight layout).
    compute_dtype : dtype of the MXU operands (f32 or bf16). Accumulation and
         the bias epilogue always stay f32.
    """
    n_ws = len(Ws)
    active = tuple(W is not None for W in Ws)
    assert any(active), "Dense with all-None Ws has no defined output"

    wts, bs, dims = [], [], []
    H = None
    for W in Ws:
        if W is None:
            continue
        w, b = W
        if H is None:
            H = w.shape[0]
        assert w.shape[0] == H, "all branches must share out_features"
        wts.append(jnp.transpose(w.astype(jnp.float32)))        # (d_i, H)
        dims.append(w.shape[1])
        if b is not None:                                        # Linear(bias=False) ok
            bs.append(b.astype(jnp.float32))

    # Lane-dense output stores: pad H up to a multiple of 128 (no-op at H=128).
    H_pad = max(_round_up(H, 128), 128)
    if H_pad != H:
        wts = [jnp.pad(wt, ((0, 0), (0, H_pad - H))) for wt in wts]

    b_sum = sum(bs) if bs else jnp.zeros((H,), jnp.float32)
    b_sum = jnp.asarray(b_sum, jnp.float32)
    if H_pad != H:
        b_sum = jnp.pad(b_sum, (0, H_pad - H))
    b_sum = b_sum.reshape(1, H_pad)                              # f32 epilogue (v5e-safe)

    wts = tuple(wt.astype(compute_dtype) for wt in wts)          # bf16 halves weight bytes

    params = (wts, b_sum)
    meta = dict(n_ws=n_ws, active=active, dims=tuple(dims), H=H, H_pad=H_pad,
                compute_dtype=compute_dtype)
    return params, meta


def _pick_batch_tile(B, K_total, H_pad, x_itemsize, *, tm_max, vmem_budget_bytes):
    """Largest sublane-aligned batch tile that fits the VMEM budget."""
    sublane = 16 if x_itemsize < 4 else 8            # bf16 packs 16 rows/vreg
    # Double-buffered activation tiles + double-buffered f32 output tile.
    per_row = 2 * (K_total * x_itemsize + H_pad * 4)
    tm = vmem_budget_bytes // max(per_row, 1)
    tm = min(tm, tm_max)
    tm = max((tm // sublane) * sublane, sublane)
    if tm >= B:
        # Full-extent batch block (block dim == array dim) is always legal...
        tm = B
        # ...but split into >= 2 grid steps when B allows so the ("parallel",)
        # axis can shard across v7x's two TensorCores.
        if B >= 2 * sublane:
            tm = _round_up(pl.cdiv(B, 2), sublane)
    return tm


def dense_forward(xs, params, meta, *, tm_max=1024, vmem_budget_bytes=24 << 20):
    """Pallas implementation of Dense.forward (parameters already prepared)."""
    wts, b_sum = params
    n_ws = meta["n_ws"]
    dims = meta["dims"]
    H, H_pad = meta["H"], meta["H_pad"]
    compute_dtype = meta["compute_dtype"]

    xs = xs[-n_ws:]                                   # mirrors `xs = xs[-len(self.Ws):]`
    x_list = [x for x, a in zip(xs, meta["active"]) if a]
    assert len(x_list) == len(wts)
    for x, d in zip(x_list, dims):
        assert x.shape[-1] == d
    B = x_list[0].shape[0]

    x_itemsize = jnp.dtype(compute_dtype).itemsize
    # bf16 operands halve the HBM bytes on this mem-bound stream; accumulation
    # stays f32 inside the kernel.
    x_list = [x.astype(compute_dtype) for x in x_list]

    K_total = sum(dims)
    tm = _pick_batch_tile(B, K_total, H_pad, x_itemsize,
                          tm_max=tm_max, vmem_budget_bytes=vmem_budget_bytes)
    grid = (pl.cdiv(B, tm),)

    weight_bytes = sum(d * H_pad * x_itemsize for d in dims) + H_pad * 4
    tile_bytes = 2 * tm * (K_total * x_itemsize + H_pad * 4)
    # Explicit scoped-VMEM request: working set + headroom, capped under the
    # 64 MiB physical VMEM of v7x (v5e's default scoped limit is only 16 MiB).
    vmem_limit = int(min(max(4 * (weight_bytes + tile_bytes), 32 << 20), 60 << 20))

    cost = pl.CostEstimate(
        flops=2 * B * K_total * H_pad,
        transcendentals=0,
        bytes_accessed=(B * K_total * x_itemsize          # activations in
                        + weight_bytes                    # resident weights + bias
                        + B * H_pad * 4),                 # output out
    )

    def _call(*, single_buffer_resident):
        x_specs = [pl.BlockSpec((tm, d), lambda i: (i, 0)) for d in dims]

        def resident_spec(shape):
            if single_buffer_resident:
                # Grid-invariant block: index_map is constant, double-buffering
                # buys nothing; single-buffering halves its VMEM footprint.
                return pl.BlockSpec(shape, lambda i: (0, 0),
                                    pipeline_mode=pl.Buffered(1))
            return pl.BlockSpec(shape, lambda i: (0, 0))

        w_specs = [resident_spec((d, H_pad)) for d in dims]
        b_spec = resident_spec((1, H_pad))

        return pl.pallas_call(
            _make_dense_kernel(len(dims)),
            out_shape=jax.ShapeDtypeStruct((B, H_pad), jnp.float32),
            grid=grid,
            in_specs=x_specs + w_specs + [b_spec],
            out_specs=pl.BlockSpec((tm, H_pad), lambda i: (i, 0)),
            compiler_params=pltpu.CompilerParams(
                dimension_semantics=("parallel",),
                vmem_limit_bytes=vmem_limit,
            ),
            cost_estimate=cost,
        )(*x_list, *wts, b_sum)

    try:
        out = _call(single_buffer_resident=True)
    except Exception:
        # TODO(synk): drop this fallback once pl.Buffered(1) single-buffering
        # of grid-invariant blocks is guaranteed on the deployed JAX version.
        out = _call(single_buffer_resident=False)

    # Partial last batch tile is handled by Pallas edge-block masking (no row
    # padding, no out[:B] copy). Only strip the H lane padding if it was added.
    return out if H_pad == H else out[:, :H]


def _reference_dense(xs, Ws):
    """Pure-JAX reference mirroring the PyTorch forward exactly."""
    n = len(Ws)
    xs = xs[-n:]
    out = None
    for x, W in zip(xs, Ws):
        if W is None:
            continue
        w, b = W
        y = x @ w.T + (b if b is not None else 0.0)
        out = y if out is None else out + y
    return out


if __name__ == "__main__":
    key = jax.random.PRNGKey(0)

    # Module config: Dense(Linear(128, 128), None, Linear(32, 128))
    B = 40           # non-multiple of the tile -> exercises edge-block masking
    H = 128
    dims = [128, None, 32]   # None marks a skipped (W is None) branch

    keys = jax.random.split(key, 8)
    Ws = []
    k_idx = 0
    for d in dims:
        if d is None:
            Ws.append(None)
            continue
        # Deterministic "Kaiming-ish" init, shapes match nn.Linear(d, H).
        w = jax.random.normal(keys[k_idx], (H, d), jnp.float32) * (1.0 / d) ** 0.5
        b = jax.random.normal(keys[k_idx + 1], (H,), jnp.float32) * 0.01
        k_idx += 2
        Ws.append((w, b))

    # Provide one extra leading activation to exercise `xs[-len(Ws):]`.
    x_extra = jax.random.normal(keys[k_idx], (B, 64), jnp.float32)
    x0 = jax.random.normal(keys[k_idx + 1], (B, 128), jnp.float32)
    x1 = jax.random.normal(keys[k_idx + 2], (B, 96), jnp.float32)  # paired w/ None W
    x2 = jax.random.normal(keys[k_idx + 3], (B, 32), jnp.float32)
    xs = [x_extra, x0, x1, x2]

    ref = _reference_dense(xs, Ws)

    # --- f32 operand path (strict tolerance) ------------------------------
    params, meta = prepare_dense_params(Ws, compute_dtype=jnp.float32)
    out = dense_forward(list(xs), params, meta)
    out = jax.block_until_ready(out)
    assert out.shape == (B, H), out.shape
    assert jnp.allclose(out, ref, atol=1e-4, rtol=1e-4), float(
        jnp.max(jnp.abs(out - ref))
    )

    # --- bf16 operand / f32 accumulate path (mem-bound win on v5e/v6e/v7x) --
    params_bf, meta_bf = prepare_dense_params(Ws, compute_dtype=jnp.bfloat16)
    out_bf = dense_forward(list(xs), params_bf, meta_bf)
    out_bf = jax.block_until_ready(out_bf)
    assert out_bf.shape == (B, H), out_bf.shape
    assert jnp.allclose(out_bf, ref, atol=1e-1, rtol=1e-1), float(
        jnp.max(jnp.abs(out_bf - ref))
    )

    print("KERNEL_OK")
</pallas_src>

<mosaic_0001>
module attributes {stable_mosaic.version = 11 : i64} {
  func.func @kernel(%arg0: i32, %arg1: memref<24x128xf32, #tpu.memory_space<vmem>>, %arg2: memref<24x32xf32, #tpu.memory_space<vmem>>, %arg3: memref<128x128xf32, #tpu.memory_space<vmem>>, %arg4: memref<32x128xf32, #tpu.memory_space<vmem>>, %arg5: memref<1x128xf32, #tpu.memory_space<vmem>>, %arg6: memref<24x128xf32, #tpu.memory_space<vmem>>) attributes {dimension_semantics = [#tpu.dimension_semantics<parallel>], iteration_bounds = array<i64: 2>, scalar_prefetch = 0 : i64, scratch_operands = 0 : i64, tpu.core_type = #tpu.core_type<tc>, window_params = [{transform_indices = @transform_0, window_bounds = array<i64: 24, 128>}, {transform_indices = @transform_1, window_bounds = array<i64: 24, 32>}, {pipeline_mode = #tpu.pipeline_mode<synchronous>, transform_indices = @transform_2, window_bounds = array<i64: 128, 128>}, {pipeline_mode = #tpu.pipeline_mode<synchronous>, transform_indices = @transform_3, window_bounds = array<i64: 32, 128>}, {pipeline_mode = #tpu.pipeline_mode<synchronous>, transform_indices = @transform_4, window_bounds = array<i64: 1, 128>}, {transform_indices = @transform_5, window_bounds = array<i64: 24, 128>}]} {
    %c0 = arith.constant 0 : index
    %c0_0 = arith.constant 0 : index
    %0 = vector.load %arg1[%c0, %c0_0] : memref<24x128xf32, #tpu.memory_space<vmem>>, vector<24x128xf32>
    %c0_1 = arith.constant 0 : index
    %c0_2 = arith.constant 0 : index
    %1 = vector.load %arg3[%c0_1, %c0_2] : memref<128x128xf32, #tpu.memory_space<vmem>>, vector<128x128xf32>
    %cst = arith.constant dense<0.000000e+00> : vector<24x128xf32>
    %2 = tpu.matmul %0, %1, %cst {dimension_numbers = #tpu.dot_dimension_numbers<[1], [0], [0], [1], [0, 0, 1, 1], [], []>} : vector<24x128xf32>, vector<128x128xf32>, vector<24x128xf32> -> vector<24x128xf32>
    %c0_3 = arith.constant 0 : index
    %c0_4 = arith.constant 0 : index
    %3 = vector.load %arg2[%c0_3, %c0_4] : memref<24x32xf32, #tpu.memory_space<vmem>>, vector<24x32xf32>
    %c0_5 = arith.constant 0 : index
    %c0_6 = arith.constant 0 : index
    %4 = vector.load %arg4[%c0_5, %c0_6] : memref<32x128xf32, #tpu.memory_space<vmem>>, vector<32x128xf32>
    %cst_7 = arith.constant dense<0.000000e+00> : vector<24x128xf32>
    %5 = tpu.matmul %3, %4, %cst_7 {dimension_numbers = #tpu.dot_dimension_numbers<[1], [0], [0], [1], [0, 0, 1, 1], [], []>} : vector<24x32xf32>, vector<32x128xf32>, vector<24x128xf32> -> vector<24x128xf32>
    %6 = arith.addf %2, %5 : vector<24x128xf32>
    %c0_8 = arith.constant 0 : index
    %c0_9 = arith.constant 0 : index
    %7 = vector.load %arg5[%c0_8, %c0_9] : memref<1x128xf32, #tpu.memory_space<vmem>>, vector<1x128xf32>
    %8 = vector.broadcast %7 : vector<1x128xf32> to vector<24x128xf32>
    %9 = arith.addf %6, %8 : vector<24x128xf32>
    %c0_10 = arith.constant 0 : index
    %c0_11 = arith.constant 0 : index
    %10 = vector.load %arg6[%c0_10, %c0_11] : memref<24x128xf32, #tpu.memory_space<vmem>>, vector<24x128xf32>
    tpu.vector_store %arg6[%c0_10, %c0_11], %9 {strides = array<i32>} : memref<24x128xf32, #tpu.memory_space<vmem>>, vector<24x128xf32>,
    return
  }
  func.func @transform_0(%arg0: i32) -> (i32, i32) {
    %c0_i32 = arith.constant 0 : i32
    %c0_i32_0 = arith.constant 0 : i32
    return %arg0, %c0_i32 : i32, i32
  }
  func.func @transform_1(%arg0: i32) -> (i32, i32) {
    %c0_i32 = arith.constant 0 : i32
    %c0_i32_0 = arith.constant 0 : i32
    return %arg0, %c0_i32 : i32, i32
  }
  func.func @transform_2(%arg0: i32) -> (i32, i32) {
    %c0_i32 = arith.constant 0 : i32
    %c0_i32_0 = arith.constant 0 : i32
    %c0_i32_1 = arith.constant 0 : i32
    return %c0_i32, %c0_i32_0 : i32, i32
  }
  func.func @transform_3(%arg0: i32) -> (i32, i32) {
    %c0_i32 = arith.constant 0 : i32
    %c0_i32_0 = arith.constant 0 : i32
    %c0_i32_1 = arith.constant 0 : i32
    return %c0_i32, %c0_i32_0 : i32, i32
  }
  func.func @transform_4(%arg0: i32) -> (i32, i32) {
    %c0_i32 = arith.constant 0 : i32
    %c0_i32_0 = arith.constant 0 : i32
    %c0_i32_1 = arith.constant 0 : i32
    return %c0_i32, %c0_i32_0 : i32, i32
  }
  func.func @transform_5(%arg0: i32) -> (i32, i32) {
    %c0_i32 = arith.constant 0 : i32
    %c0_i32_0 = arith.constant 0 : i32
    return %arg0, %c0_i32 : i32, i32
  }
}

module attributes {stable_mosaic.version = 11 : i64} {
  func.func @kernel(%arg0: i32, %arg1: memref<24x128xf32, #tpu.memory_space<vmem>>, %arg2: memref<24x32xf32, #tpu.memory_space<vmem>>, %arg3: memref<128x128xf32, #tpu.memory_space<vmem>>, %arg4: memref<32x128xf32, #tpu.memory_space<vmem>>, %arg5: memref<1x128xf32, #tpu.memory_space<vmem>>, %arg6: memref<24x128xf32, #tpu.memory_space<vmem>>) attributes {dimension_semantics = [#tpu.dimension_semantics<parallel>], iteration_bounds = array<i64: 2>, scalar_prefetch = 0 : i64, scratch_operands = 0 : i64, tpu.core_type = #tpu.core_type<tc>, window_params = [{transform_indices = @transform_0, window_bounds = array<i64: 24, 128>}, {transform_indices = @transform_1, window_bounds = array<i64: 24, 32>}, {pipeline_mode = #tpu.pipeline_mode<synchronous>, transform_indices = @transform_2, window_bounds = array<i64: 128, 128>}, {pipeline_mode = #tpu.pipeline_mode<synchronous>, transform_indices = @transform_3, window_bounds = array<i64: 32, 128>}, {pipeline_mode = #tpu.pipeline_mode<synchronous>, transform_indices = @transform_4, window_bounds = array<i64: 1, 128>}, {transform_indices = @transform_5, window_bounds = array<i64: 24, 128>}]} {
    %c0 = arith.constant 0 : index
    %c0_0 = arith.constant 0 : index
    %0 = vector.load %arg1[%c0, %c0_0] : memref<24x128xf32, #tpu.memory_space<vmem>>, vector<24x128xf32>
    %c0_1 = arith.constant 0 : index
    %c0_2 = arith.constant 0 : index
    %1 = vector.load %arg3[%c0_1, %c0_2] : memref<128x128xf32, #tpu.memory_space<vmem>>, vector<128x128xf32>
    %cst = arith.constant dense<0.000000e+00> : vector<24x128xf32>
    %2 = tpu.matmul %0, %1, %cst {dimension_numbers = #tpu.dot_dimension_numbers<[1], [0], [0], [1], [0, 0, 1, 1], [], []>} : vector<24x128xf32>, vector<128x128xf32>, vector<24x128xf32> -> vector<24x128xf32>
    %c0_3 = arith.constant 0 : index
    %c0_4 = arith.constant 0 : index
    %3 = vector.load %arg2[%c0_3, %c0_4] : memref<24x32xf32, #tpu.memory_space<vmem>>, vector<24x32xf32>
    %c0_5 = arith.constant 0 : index
    %c0_6 = arith.constant 0 : index
    %4 = vector.load %arg4[%c0_5, %c0_6] : memref<32x128xf32, #tpu.memory_space<vmem>>, vector<32x128xf32>
    %cst_7 = arith.constant dense<0.000000e+00> : vector<24x128xf32>
    %5 = tpu.matmul %3, %4, %cst_7 {dimension_numbers = #tpu.dot_dimension_numbers<[1], [0], [0], [1], [0, 0, 1, 1], [], []>} : vector<24x32xf32>, vector<32x128xf32>, vector<24x128xf32> -> vector<24x128xf32>
    %6 = arith.addf %2, %5 : vector<24x128xf32>
    %c0_8 = arith.constant 0 : index
    %c0_9 = arith.constant 0 : index
    %7 = vector.load %arg5[%c0_8, %c0_9] : memref<1x128xf32, #tpu.memory_space<vmem>>, vector<1x128xf32>
    %8 = vector.broadcast %7 : vector<1x128xf32> to vector<24x128xf32>
    %9 = arith.addf %6, %8 : vector<24x128xf32>
    %c0_10 = arith.constant 0 : index
    %c0_11 = arith.constant 0 : index
    %10 = vector.load %arg6[%c0_10, %c0_11] : memref<24x128xf32, #tpu.memory_space<vmem>>, vector<24x128xf32>
    tpu.vector_store %arg6[%c0_10, %c0_11], %9 {strides = array<i32>} : memref<24x128xf32, #tpu.memory_space<vmem>>, vector<24x128xf32>,
    return
  }
  func.func @transform_0(%arg0: i32) -> (i32, i32) {
    %c0_i32 = arith.constant 0 : i32
    %c0_i32_0 = arith.constant 0 : i32
    return %arg0, %c0_i32 : i32, i32
  }
  func.func @transform_1(%arg0: i32) -> (i32, i32) {
    %c0_i32 = arith.constant 0 : i32
    %c0_i32_0 = arith.constant 0 : i32
    return %arg0, %c0_i32 : i32, i32
  }
  func.func @transform_2(%arg0: i32) -> (i32, i32) {
    %c0_i32 = arith.constant 0 : i32
    %c0_i32_0 = arith.constant 0 : i32
    %c0_i32_1 = arith.constant 0 : i32
    return %c0_i32, %c0_i32_0 : i32, i32
  }
  func.func @transform_3(%arg0: i32) -> (i32, i32) {
    %c0_i32 = arith.constant 0 : i32
    %c0_i32_0 = arith.constant 0 : i32
    %c0_i32_1 = arith.constant 0 : i32
    return %c0_i32, %c0_i32_0 : i32, i32
  }
  func.func @transform_4(%arg0: i32) -> (i32, i32) {
    %c0_i32 = arith.constant 0 : i32
    %c0_i32_0 = arith.constant 0 : i32
    %c0_i32_1 = arith.constant 0 : i32
    return %c0_i32, %c0_i32_0 : i32, i32
  }
  func.func @transform_5(%arg0: i32) -> (i32, i32) {
    %c0_i32 = arith.constant 0 : i32
    %c0_i32_0 = arith.constant 0 : i32
    return %arg0, %c0_i32 : i32, i32
  }
}

</mosaic_0001>

<bundles_post_ra>
// kernel: tpu_custom_call.1
= control target key start
LH: loop header
LB: loop body
LE: loop exit
PB: predicated region body
PF: predicated region fallthrough
CT: control target
= control target key end

     0   :  { %10 = vsyncpa [#allocation3], 0  ;;  %s1150_s0 = inlined_call_operand.vmem [shape: f32[40,128], index: 0, kind: input, shape index: {}]   ;;  %s1151_s1 = inlined_call_operand.vmem [shape: f32[40,32], index: 1, kind: input, shape index: {}]   ;;  %s1152_s2 = inlined_call_operand.hbm [shape: f32[128,128], index: 2, kind: input, shape index: {}]   ;;  %s1153_s3 = inlined_call_operand.vmem [shape: f32[32,128], index: 3, kind: input, shape index: {}]   ;;  %s1154_s4 = inlined_call_operand.vmem [shape: f32[1,128], index: 4, kind: input, shape index: {}]   ;;  %s1155_s5 = inlined_call_operand.hbm [shape: f32[40,128], index: 5, kind: output, shape index: {}]  }
   0x1   :  { %11 = vsyncpa [#allocation4], 0 }
   0x2   :  { %13 = vsyncpa [#allocation4 + $0x1], 0  ;;  %s948_s18 = smov 0   ;;  %s950_s19 = smov 0  }
   0x3   :  { %s952_s20 = smov 0   ;;  %s954_s21 = smov 0  }
   0x4 LB: > { %s969_s22 = sadd.s32 4294967295, %s907_s21   ;;  %s622_s23 = sadd.s32 4294967294, %s907_s21   ;;  %s907_s21 = sphi %s954_s21, %s1170_s21   ;;  %s903_s20 = sphi %s952_s20, %s1169_s20   ;;  %s899_s19 = sphi %s950_s19, %s1168_s19   ;;  %s895_s18 = sphi %s948_s18, %s1167_s18  }
   0x5   : > { %s973_s24 = sadd.s32 1, %s907_s21   ;;  %s141_s25 = sadd.s32 1, %s903_s20 }
   0x6   : > { %s138_s26 = ssub.s32 %s907_s21, %s973_s24  ;;  %p151_p0 = scmp.ne.s32.totalorder %s903_s20, %s899_s19 }
   0x7   : > { %p139_p1 = scmp.eq.s32.totalorder %s138_s26, 0  ;;  %p152_p2 = scmp.eq.s32.totalorder %s969_s22, 1 }
   0x8   : > { %p157_p3 = scmp.ne.s32.totalorder %s899_s19, %s895_s18  ;;  %p158_p4 = scmp.eq.s32.totalorder %s622_s23, 1 }
   0x9   : > { %s984_s27 = scalar_select %p139_p1, %s903_s20, %s141_s25  }
   0xa   : > { %p986_p5 = por %p152_p2, %p151_p0  ;;  %p990_p6 = por %p158_p4, %p157_p3 }
   0xb   : > { %p623_p7 = scmp.ge.s32.totalorder %s907_s21, 1  ;;  %p165_p8 = scmp.lt.s32.totalorder %s907_s21, 3 }
   0xc   : > { %s1158_s28 = scalar_select %p986_p5, 1, 0 }
   0xd   : > { %s1159_s29 = scalar_select %p990_p6, 1, 0 }
   0xe   : > { %p1156_p9 = scmp.eq.s32.totalorder %s969_s22, 0  ;;  %p997_p10 = pnand %p623_p7, %p165_p8 }
   0xf   : > { %s909_s6 = smov [#allocation2]   ;;  %s813_s11 = scalar_lea.hbm %s1152_s2, 2048 }
  0x10   : > { %s1160_s30 = scalar_select %p997_p10, 1, 0 }
  0x11   : > { %s177_s7 = sshll.u32 %s909_s6, 4  ;;  %p762_p11 = pneg %p997_p10  ;;  %s178_s7 = int_to_ptr.vmem [resolvable:$true] %s177_s7 }
  0x12   : > { %p814_p13 = scmp.ne.s32.totalorder %s1152_s2, %s813_s11  ;;  %p820_p3 = scmp.lt.u32.totalorder %s813_s11, %s1152_s2 }
  0x13   : > { %p1005_p12 = pnand %p1156_p9, %p762_p11 }
  0x15   : > { %p815_p0 = pneg %p1005_p12 }
  0x17   : > { %p816_p1 = pnand %p815_p0, %p814_p13 }
  0x19   : > { %p817_p2 = pneg %p816_p1 }
  0x1b   : > { %p822_p4 = pnand %p820_p3, %p817_p2 }
  0x1d   : > { %825 = shalt.err (!%p822_p4)
}
  0x1e   : > { %s826_s16 = scalar_lea.vmem %s178_s7, 2048  ;;  %p834_p9 = scmp.lt.s32.totalorder %s178_s7, %s178_s7 }
  0x1f   : > { %p827_p7 = scmp.ne.s32.totalorder %s178_s7, %s826_s16  ;;  %p835_p6 = scmp.lt.s32.totalorder %s826_s16, %s826_s16 }
  0x21   : > { %p829_p8 = pnand %p827_p7, %p815_p0  ;;  %p836_p5 = por %p835_p6, %p834_p9 }
  0x23   : > { %p830_p11 = pneg %p829_p8 }
  0x25   : > { %p837_p10 = pnand %p836_p5, %p830_p11 }
  0x27   : > { %840 = shalt.err (!%p837_p10)
}
  0x28   : > { %s910_s17 = smov 128   ;;  %s911_s23 = smov 8  }
  0x29   : > { %765 = dma.hbm_to_vmem [thread:$0]  (!%p1005_p12), %s1152_s2, 2048, %s178_s7, [#allocation3], %s910_s17, %s910_s17, %s911_s23  }
  0x2a   : > { %p1162_p13 = scmp.ne.s32.totalorder %s1160_s30, 0 }
  0x2b   : > { %p1163_p1 = scmp.eq.s32.totalorder (!%p1162_p13), %s969_s22, 0 }
  0x2c   : > { %233 = sbr.rel (%p1162_p13) target bundleno = 339 (0x153), region = 40 }
  0x33   : > { %886 = dma.done.wait (%p1163_p1), [#allocation3], 2048   ;;  %p1164_p0 = pmov %p1163_p1 }
  0x34   : > { %s1032_s6 = smul.u32 3, %s969_s22  ;;  %v912_v0 = vmov 0.0|0.0   ;;  %vm913_vm0 = vmmov 0   ;;  %v914_v1 = vmov 0.0   ;;  %v310_v2 = vld [vmem:[#allocation2] sm:$0xff]  ;;  %v311_v3 = vld [vmem:[#allocation2 + $0x8] sm:$0xff] }
  0x35   : > { %888 = vsyncadd (%p1164_p0), [#allocation3], 4294965248  ;;  %732 = vmatprep.subr.bf16.mxu1 %v912_v0  ;;  %726 = vmatprep.subr.bf16.mxu0 %v912_v0  ;;  %v312_v4 = vld [vmem:[#allocation2 + $0x10] sm:$0xff]  ;;  %v733_v5 = vpack.c.bf16 %v311_v3, %v310_v2  ;;  %v313_v6 = vld [vmem:[#allocation2 + $0x18] sm:$0xff]  ;;  %vm333_vm1 = vcmask 261120   ;;  %s271_s8 = sand.u32 1, %s899_s19  }
  0x36   : > { %676 = vmatprep.mubr.msk.f32.mxu0 %vm913_vm0, %v914_v1  ;;  %717 = vmatprep.mubr.msk.f32.mxu1 %vm913_vm0, %v914_v1  ;;  %p279_p5 = scmp.lt.s32.totalorder %s1032_s6, 4  ;;  %v736_v7 = vpack.c.bf16 %v313_v6, %v312_v4  ;;  %v314_v8 = vld [vmem:[#allocation2 + $0x20] sm:$0xff]  ;;  %v315_v9 = vld [vmem:[#allocation2 + $0x28] sm:$0xff]  ;;  %v331_v13 = vld [vmem:[%s1153_s3 + $0x10] sm:$0xff]  ;;  %s1090_s12 = scalar_lea.sflag [#allocation4], %s271_s8 }
  0x37   : > { %734 = vmatpush3.bf16.msra.mxu1 %v733_v5  ;;  %v329_v10 = vld [vmem:[%s1153_s3] sm:$0xff]  ;;  %v330_v11 = vld [vmem:[%s1153_s3 + $0x8] sm:$0xff]  ;;  %v332_v14 = vld [vmem:[%s1153_s3 + $0x18] sm:$0xff]  ;;  %v739_v15 = vpack.c.bf16 %v315_v9, %v314_v8  ;;  %p1165_p6 = scmp.ne.s32.totalorder %s1158_s28, 0 }
  0x38   : > { %s1042_s30 = scalar_select %p279_p5, %s1032_s6, 4  ;;  %735 = vmatprep.subr.bf16.mxu1 %v912_v0  ;;  %v727_v12 = vpack.c.bf16 %v330_v11, %v329_v10  ;;  %v730_v16 = vpack.c.bf16 %v332_v14, %v331_v13  ;;  %v316_v17 = vld [vmem:[#allocation2 + $0x30] sm:$0xff]  ;;  %v317_v18 = vld [vmem:[#allocation2 + $0x38] sm:$0xff]  ;;  %v318_v21 = vld [vmem:[#allocation2 + $0x40] sm:$0xff] }
  0x39   : > { %v742_v19 = vpack.c.bf16 %v317_v18, %v316_v17  ;;  %v319_v22 = vld [vmem:[#allocation2 + $0x48] sm:$0xff]  ;;  %v320_v25 = vld [vmem:[#allocation2 + $0x50] sm:$0xff]  ;;  %v321_v26 = vld [vmem:[#allocation2 + $0x58] sm:$0xff]  ;;  %s525_s13 = ssub.s32 (%p1165_p6), 5, %s1032_s6 }
  0x3a   : > { %s628_s15 = sshll.u32 %s1042_s30, 3  ;;  %728 = vmatpush3.bf16.msra.mxu0 %v727_v12  ;;  %v745_v23 = vpack.c.bf16 %v319_v22, %v318_v21  ;;  %v748_v27 = vpack.c.bf16 %v321_v26, %v320_v25  ;;  %v322_v29 = vld [vmem:[#allocation2 + $0x60] sm:$0xff]  ;;  %v323_v30 = vld [vmem:[#allocation2 + $0x68] sm:$0xff]  ;;  %v324_v32 = vld [vmem:[#allocation2 + $0x70] sm:$0xff]  ;;  %s756_s30 = smul.u32 24, %s271_s8 }
  0x3b   : > { %737 = vmatpush3.bf16.msra.mxu1 %v736_v7  ;;  %729 = vmatprep.subr.bf16.mxu0 %v912_v0  ;;  %s296_s23 = scalar_lea.vmem %s1151_s1, %s628_s15  ;;  %v751_v31 = vpack.c.bf16 %v323_v30, %v322_v29  ;;  %v325_v33 = vld [vmem:[#allocation2 + $0x78] sm:$0xff]  ;;  %s282_s7 = scalar_lea.vmem %s1150_s0, %s628_s15  ;;  %v633_v45 = vld [vmem:[%s1154_s4] ss:$0 sm:$0xff] }
  0x3c   : > { %738 = vmatprep.subr.bf16.mxu1 %v912_v0  ;;  %v326_v20 = vld [vmem:[%s296_s23] sm:$0xff]  ;;  %v327_v24 = vld [vmem:[%s296_s23 + $0x8] sm:$0xff]  ;;  %v328_v28 = vld [vmem:[%s296_s23 + $0x10] sm:$0xff]  ;;  %v754_v34 = vpack.c.bf16 %v325_v33, %v324_v32  ;;  %s273_s11 = scalar_lea.vmem [#allocation5], %s756_s30  ;;  %p526_p9 = scmp.lt.s32.totalorder (%p1165_p6), %s525_s13, 3 }
  0x3d   : > { %v307_v35 = vld [vmem:[%s282_s7] sm:$0xff]  ;;  %v308_v36 = vld [vmem:[%s282_s7 + $0x8] sm:$0xff]  ;;  %v309_v37 = vld [vmem:[%s282_s7 + $0x10] sm:$0xff] }
  0x3e   : > { %731 = vmatpush3.bf16.msra.mxu0 %v730_v16 }
  0x3f   : > { %740 = vmatpush3.bf16.msra.mxu1 %v739_v15 }
  0x40   : > { %741 = vmatprep.subr.bf16.mxu1 %v912_v0 }
  0x41   : > { %677 = vmatmul.mubr.msk.f32.vlgmr.msra.gmra.mrb[0].mxu0 %vm333_vm1, %v326_v20 }
  0x42   : > { %679 = vmatprep.mubr.msk.f32.mxu0 %vm913_vm0, %v914_v1 }
  0x43   : > { %743 = vmatpush3.bf16.msra.mxu1 %v742_v19 }
  0x44   : > { %744 = vmatprep.subr.bf16.mxu1 %v912_v0 }
  0x45   : > { %680 = vmatmul.mubr.msk.f32.gmra.mrb[2].mxu0 %vm333_vm1, %v327_v24 }
  0x46   : > { %682 = vmatprep.mubr.msk.f32.mxu0 %vm913_vm0, %v914_v1 }
  0x47   : > { %746 = vmatpush3.bf16.msra.mxu1 %v745_v23 }
  0x48   : > { %747 = vmatprep.subr.bf16.mxu1 %v912_v0 }
  0x49   : > { %683 = vmatmul.mubr.msk.f32.gmra.mrb[4].mxu0 %vm333_vm1, %v328_v28 }
  0x4b   : > { %749 = vmatpush3.bf16.msra.mxu1 %v748_v27 }
  0x4c   : > { %750 = vmatprep.subr.bf16.mxu1 %v912_v0 }
  0x4f   : > { %752 = vmatpush3.bf16.msra.mxu1 %v751_v31 }
  0x50   : > { %753 = vmatprep.subr.bf16.mxu1 %v912_v0 }
  0x53   : > { %755 = vmatpush3.bf16.msra.mxu1 %v754_v34 }
  0x56   : > { %718 = vmatmul.mubr.f32.vlgmr.msra.gmra.mrb[0].mxu1 %v307_v35 }
  0x57   : > { %720 = vmatprep.mubr.msk.f32.mxu1 %vm913_vm0, %v914_v1 }
  0x5a   : > { %721 = vmatmul.mubr.f32.gmra.mrb[2].mxu1 %v308_v36 }
  0x5b   : > { %723 = vmatprep.mubr.msk.f32.mxu1 %vm913_vm0, %v914_v1 }
  0x5e   : > { %724 = vmatmul.mubr.f32.gmra.mrb[4].mxu1 %v309_v37 }
 0x114   : > { %v409_v38 = vpop.f32.mrb[0].mxu0 }
 0x115   : > { %v678_v39 = vpop.f32.mrb[1].mxu0 }
 0x118   : > { %v414_v40 = vpop.f32.mrb[2].mxu0 }
 0x119   : > { %v681_v41 = vpop.f32.mrb[3].mxu0 }
 0x11c   : > { %v419_v42 = vpop.f32.mrb[4].mxu0 }
 0x11d   : > { %v684_v43 = vpop.f32.mrb[5].mxu0 }
 0x129   : > { %v489_v44 = vpop.f32.mrb[0].mxu1 }
 0x12a   : > { %v490_v46 = vadd.f32 %v489_v44, %v409_v38  ;;  %v719_v47 = vpop.f32.mrb[1].mxu1 }
 0x12c   : > { %v510_v48 = vadd.f32 %v633_v45, %v490_v46 }
 0x12d   : > { %v494_v49 = vpop.f32.mrb[2].mxu1 }
 0x12e   : > { %513 = vst [vmem:[%s273_s11] sm:$0xff] %v510_v48  ;;  %v495_v50 = vadd.f32 %v494_v49, %v414_v40  ;;  %v722_v51 = vpop.f32.mrb[3].mxu1 }
 0x130   : > { %v511_v52 = vadd.f32 %v633_v45, %v495_v50  ;;  %523 = sbr.rel (!%p1165_p6) target bundleno = 339 (0x153), region = 48 }
 0x131   : > { %v499_v53 = vpop.f32.mrb[4].mxu1 }
 0x132   : > { %514 = vst [vmem:[%s273_s11 + $0x8] sm:$0xff] %v511_v52  ;;  %v500_v54 = vadd.f32 %v499_v53, %v419_v42  ;;  %v725_v55 = vpop.f32.mrb[5].mxu1 }
 0x134   : > { %v512_v56 = vadd.f32 %v633_v45, %v500_v54 }
 0x136   : > { %515 = vst [vmem:[%s273_s11 + $0x10] sm:$0xff] %v512_v56 }
 0x137   : > { %s1172_s13 = smov (!%p526_p9, %s525_s13), 3 }
 0x138   : > { %s1095_s14 = sshll.u32 %s1172_s13, 7 }
 0x139   : > { %s530_s15 = ssub.s32 384, %s1095_s14 }
 0x13a   : > { %531 = vsyncadd %s1090_s12, %s530_s15  ;;  %p635_p10 = scmp.ne.s32.totalorder %s1095_s14, 0  ;;  %s641_s16 = smul.u32 384, %s969_s22 }
 0x13b   : > { %s536_s17 = sshll.u32 %s273_s11, 4  ;;  %s915_s26 = smov [#allocation5]   ;;  %s1106_s17 = int_to_ptr.vmem [resolvable:$true] %s536_s17 }
 0x13c   : > { %s1104_s25 = scalar_lea.hbm %s1155_s5, %s641_s16  ;;  %s841_s6 = scalar_lea.vmem %s1106_s17, %s1095_s14 }
 0x13d   : > { %p842_p12 = scmp.ne.s32.totalorder %s1106_s17, %s841_s6  ;;  %s845_s7 = sshll.u32 %s915_s26, 4  ;;  %s846_s7 = int_to_ptr.vmem [resolvable:$false] %s845_s7 }
 0x13e   : > { %s847_s22 = scalar_lea.vmem %s846_s7, 768  ;;  %p848_p4 = scmp.lt.s32.totalorder %s1106_s17, %s846_s7 }
 0x13f   : > { %p843_p2 = pnand %p842_p12, %p635_p10  ;;  %p849_p7 = scmp.lt.s32.totalorder %s847_s22, %s841_s6 }
 0x141   : > { %p844_p3 = pneg %p843_p2  ;;  %p850_p8 = por %p849_p7, %p848_p4 }
 0x143   : > { %p851_p11 = pnand %p850_p8, %p844_p3 }
 0x145   : > { %854 = shalt.err (!%p851_p11)
}
 0x146   : > { %s855_s8 = scalar_lea.hbm %s1104_s25, %s1095_s14  ;;  %s859_s10 = scalar_lea.hbm %s1155_s5, 640 }
 0x147   : > { %p856_p13 = scmp.ne.s32.totalorder %s1104_s25, %s855_s8  ;;  %p860_p5 = scmp.lt.u32.totalorder %s1104_s25, %s1155_s5 }
 0x148   : > { %p861_p6 = scmp.lt.u32.totalorder %s859_s10, %s855_s8  ;;  %p863_p12 = scmp.lt.u32.totalorder %s855_s8, %s1104_s25 }
 0x149   : > { %p857_p1 = pnand %p856_p13, %p635_p10 }
 0x14a   : > { %p862_p9 = por %p861_p6, %p860_p5 }
 0x14b   : > { %p858_p0 = pneg %p857_p1 }
 0x14c   : > { %p864_p2 = por %p863_p12, %p862_p9 }
 0x14e   : > { %p865_p3 = pnand %p864_p2, %p858_p0 }
 0x150   : > { %868 = shalt.err (!%p865_p3)
}
 0x151   : > { %s916_s15 = smov 128   ;;  %s917_s16 = smov 8  }
 0x152   : > { %542 = dma.vmem_to_hbm [thread:$0]  (%p635_p10), %s1106_s17, %s1095_s14, %s1104_s25, %s1090_s12, %s916_s15, %s916_s15, %s917_s16  }
 0x153 PF: > { %p772_p4 = scmp.ge.s32.totalorder %s907_s21, 2  ;;  %s551_s23 = sand.u32 1, %s895_s18  }
 0x154   : > { %p1166_p7 = scmp.ne.s32.totalorder %s1159_s29, 0  ;;  %s552_s28 = scalar_lea.sflag [#allocation4], %s551_s23 }
 0x156   : > { %p767_p8 = pnand %p772_p4, %p1166_p7 }
 0x158   : > { %890 = dma.done.wait (!%p767_p8), %s552_s28, 384  }
 0x159   : > { %892 = vsyncadd (!%p767_p8), %s552_s28, 4294966912  ;;  %p16_p11 = scmp.ge.s32.totalorder %s973_s24, 4   ;;  %s1167_s18 = smov %s899_s19 }
 0x15a   : > { %s1168_s19 = smov %s903_s20  ;;  %s1169_s20 = smov %s984_s27 }
 0x15b   : > { %s1170_s21 = smov %s973_s24  ;;  %18 = sbr.rel (!%p16_p11) target bundleno = 4 (0x4), region = 83 }
 0x162   :  { %557 = vsyncpa [#allocation3], 1 }
 0x163   :  { %559 = vsyncpa [#allocation3 + $0x1], 1 }
 0x164   :  { %560 = vsyncpa [#allocation4], 1 }
 0x165   :  { %562 = vsyncpa [#allocation4 + $0x1], 1 }

// kernel: tpu_custom_call.1
= control target key start
LH: loop header
LB: loop body
LE: loop exit
PB: predicated region body
PF: predicated region fallthrough
CT: control target
= control target key end

     0   :  { %10 = vsyncpa [#allocation3], 0  ;;  %s1150_s0 = inlined_call_operand.vmem [shape: f32[40,128], index: 0, kind: input, shape index: {}]   ;;  %s1151_s1 = inlined_call_operand.vmem [shape: f32[40,32], index: 1, kind: input, shape index: {}]   ;;  %s1152_s2 = inlined_call_operand.hbm [shape: f32[128,128], index: 2, kind: input, shape index: {}]   ;;  %s1153_s3 = inlined_call_operand.vmem [shape: f32[32,128], index: 3, kind: input, shape index: {}]   ;;  %s1154_s4 = inlined_call_operand.vmem [shape: f32[1,128], index: 4, kind: input, shape index: {}]   ;;  %s1155_s5 = inlined_call_operand.hbm [shape: f32[40,128], index: 5, kind: output, shape index: {}]  }
   0x1   :  { %11 = vsyncpa [#allocation4], 0 }
   0x2   :  { %13 = vsyncpa [#allocation4 + $0x1], 0  ;;  %s948_s18 = smov 0   ;;  %s950_s19 = smov 0  }
   0x3   :  { %s952_s20 = smov 0   ;;  %s954_s21 = smov 0  }
   0x4 LB: > { %s969_s22 = sadd.s32 4294967295, %s907_s21   ;;  %s622_s23 = sadd.s32 4294967294, %s907_s21   ;;  %s907_s21 = sphi %s954_s21, %s1170_s21   ;;  %s903_s20 = sphi %s952_s20, %s1169_s20   ;;  %s899_s19 = sphi %s950_s19, %s1168_s19   ;;  %s895_s18 = sphi %s948_s18, %s1167_s18  }
   0x5   : > { %s973_s24 = sadd.s32 1, %s907_s21   ;;  %s141_s25 = sadd.s32 1, %s903_s20 }
   0x6   : > { %s138_s26 = ssub.s32 %s907_s21, %s973_s24  ;;  %p151_p0 = scmp.ne.s32.totalorder %s903_s20, %s899_s19 }
   0x7   : > { %p139_p1 = scmp.eq.s32.totalorder %s138_s26, 0  ;;  %p152_p2 = scmp.eq.s32.totalorder %s969_s22, 1 }
   0x8   : > { %p157_p3 = scmp.ne.s32.totalorder %s899_s19, %s895_s18  ;;  %p158_p4 = scmp.eq.s32.totalorder %s622_s23, 1 }
   0x9   : > { %s984_s27 = scalar_select %p139_p1, %s903_s20, %s141_s25  }
   0xa   : > { %p986_p5 = por %p152_p2, %p151_p0  ;;  %p990_p6 = por %p158_p4, %p157_p3 }
   0xb   : > { %p623_p7 = scmp.ge.s32.totalorder %s907_s21, 1  ;;  %p165_p8 = scmp.lt.s32.totalorder %s907_s21, 3 }
   0xc   : > { %s1158_s28 = scalar_select %p986_p5, 1, 0 }
   0xd   : > { %s1159_s29 = scalar_select %p990_p6, 1, 0 }
   0xe   : > { %p1156_p9 = scmp.eq.s32.totalorder %s969_s22, 0  ;;  %p997_p10 = pnand %p623_p7, %p165_p8 }
   0xf   : > { %s909_s6 = smov [#allocation2]   ;;  %s813_s11 = scalar_lea.hbm %s1152_s2, 2048 }
  0x10   : > { %s1160_s30 = scalar_select %p997_p10, 1, 0 }
  0x11   : > { %s177_s7 = sshll.u32 %s909_s6, 4  ;;  %p762_p11 = pneg %p997_p10  ;;  %s178_s7 = int_to_ptr.vmem [resolvable:$true] %s177_s7 }
  0x12   : > { %p814_p13 = scmp.ne.s32.totalorder %s1152_s2, %s813_s11  ;;  %p820_p3 = scmp.lt.u32.totalorder %s813_s11, %s1152_s2 }
  0x13   : > { %p1005_p12 = pnand %p1156_p9, %p762_p11 }
  0x15   : > { %p815_p0 = pneg %p1005_p12 }
  0x17   : > { %p816_p1 = pnand %p815_p0, %p814_p13 }
  0x19   : > { %p817_p2 = pneg %p816_p1 }
  0x1b   : > { %p822_p4 = pnand %p820_p3, %p817_p2 }
  0x1d   : > { %825 = shalt.err (!%p822_p4)
}
  0x1e   : > { %s826_s16 = scalar_lea.vmem %s178_s7, 2048  ;;  %p834_p9 = scmp.lt.s32.totalorder %s178_s7, %s178_s7 }
  0x1f   : > { %p827_p7 = scmp.ne.s32.totalorder %s178_s7, %s826_s16  ;;  %p835_p6 = scmp.lt.s32.totalorder %s826_s16, %s826_s16 }
  0x21   : > { %p829_p8 = pnand %p827_p7, %p815_p0  ;;  %p836_p5 = por %p835_p6, %p834_p9 }
  0x23   : > { %p830_p11 = pneg %p829_p8 }
  0x25   : > { %p837_p10 = pnand %p836_p5, %p830_p11 }
  0x27   : > { %840 = shalt.err (!%p837_p10)
}
  0x28   : > { %s910_s17 = smov 128   ;;  %s911_s23 = smov 8  }
  0x29   : > { %765 = dma.hbm_to_vmem [thread:$0]  (!%p1005_p12), %s1152_s2, 2048, %s178_s7, [#allocation3], %s910_s17, %s910_s17, %s911_s23  }
  0x2a   : > { %p1162_p13 = scmp.ne.s32.totalorder %s1160_s30, 0 }
  0x2b   : > { %p1163_p1 = scmp.eq.s32.totalorder (!%p1162_p13), %s969_s22, 0 }
  0x2c   : > { %233 = sbr.rel (%p1162_p13) target bundleno = 339 (0x153), region = 40 }
  0x33   : > { %886 = dma.done.wait (%p1163_p1), [#allocation3], 2048   ;;  %p1164_p0 = pmov %p1163_p1 }
  0x34   : > { %s1032_s6 = smul.u32 3, %s969_s22  ;;  %v912_v0 = vmov 0.0|0.0   ;;  %vm913_vm0 = vmmov 0   ;;  %v914_v1 = vmov 0.0   ;;  %v310_v2 = vld [vmem:[#allocation2] sm:$0xff]  ;;  %v311_v3 = vld [vmem:[#allocation2 + $0x8] sm:$0xff] }
  0x35   : > { %888 = vsyncadd (%p1164_p0), [#allocation3], 4294965248  ;;  %732 = vmatprep.subr.bf16.mxu1 %v912_v0  ;;  %726 = vmatprep.subr.bf16.mxu0 %v912_v0  ;;  %v312_v4 = vld [vmem:[#allocation2 + $0x10] sm:$0xff]  ;;  %v733_v5 = vpack.c.bf16 %v311_v3, %v310_v2  ;;  %v313_v6 = vld [vmem:[#allocation2 + $0x18] sm:$0xff]  ;;  %vm333_vm1 = vcmask 261120   ;;  %s271_s8 = sand.u32 1, %s899_s19  }
  0x36   : > { %676 = vmatprep.mubr.msk.f32.mxu0 %vm913_vm0, %v914_v1  ;;  %717 = vmatprep.mubr.msk.f32.mxu1 %vm913_vm0, %v914_v1  ;;  %p279_p5 = scmp.lt.s32.totalorder %s1032_s6, 4  ;;  %v736_v7 = vpack.c.bf16 %v313_v6, %v312_v4  ;;  %v314_v8 = vld [vmem:[#allocation2 + $0x20] sm:$0xff]  ;;  %v315_v9 = vld [vmem:[#allocation2 + $0x28] sm:$0xff]  ;;  %v331_v13 = vld [vmem:[%s1153_s3 + $0x10] sm:$0xff]  ;;  %s1090_s12 = scalar_lea.sflag [#allocation4], %s271_s8 }
  0x37   : > { %734 = vmatpush3.bf16.msra.mxu1 %v733_v5  ;;  %v329_v10 = vld [vmem:[%s1153_s3] sm:$0xff]  ;;  %v330_v11 = vld [vmem:[%s1153_s3 + $0x8] sm:$0xff]  ;;  %v332_v14 = vld [vmem:[%s1153_s3 + $0x18] sm:$0xff]  ;;  %v739_v15 = vpack.c.bf16 %v315_v9, %v314_v8  ;;  %p1165_p6 = scmp.ne.s32.totalorder %s1158_s28, 0 }
  0x38   : > { %s1042_s30 = scalar_select %p279_p5, %s1032_s6, 4  ;;  %735 = vmatprep.subr.bf16.mxu1 %v912_v0  ;;  %v727_v12 = vpack.c.bf16 %v330_v11, %v329_v10  ;;  %v730_v16 = vpack.c.bf16 %v332_v14, %v331_v13  ;;  %v316_v17 = vld [vmem:[#allocation2 + $0x30] sm:$0xff]  ;;  %v317_v18 = vld [vmem:[#allocation2 + $0x38] sm:$0xff]  ;;  %v318_v21 = vld [vmem:[#allocation2 + $0x40] sm:$0xff] }
  0x39   : > { %v742_v19 = vpack.c.bf16 %v317_v18, %v316_v17  ;;  %v319_v22 = vld [vmem:[#allocation2 + $0x48] sm:$0xff]  ;;  %v320_v25 = vld [vmem:[#allocation2 + $0x50] sm:$0xff]  ;;  %v321_v26 = vld [vmem:[#allocation2 + $0x58] sm:$0xff]  ;;  %s525_s13 = ssub.s32 (%p1165_p6), 5, %s1032_s6 }
  0x3a   : > { %s628_s15 = sshll.u32 %s1042_s30, 3  ;;  %728 = vmatpush3.bf16.msra.mxu0 %v727_v12  ;;  %v745_v23 = vpack.c.bf16 %v319_v22, %v318_v21  ;;  %v748_v27 = vpack.c.bf16 %v321_v26, %v320_v25  ;;  %v322_v29 = vld [vmem:[#allocation2 + $0x60] sm:$0xff]  ;;  %v323_v30 = vld [vmem:[#allocation2 + $0x68] sm:$0xff]  ;;  %v324_v32 = vld [vmem:[#allocation2 + $0x70] sm:$0xff]  ;;  %s756_s30 = smul.u32 24, %s271_s8 }
  0x3b   : > { %737 = vmatpush3.bf16.msra.mxu1 %v736_v7  ;;  %729 = vmatprep.subr.bf16.mxu0 %v912_v0  ;;  %s296_s23 = scalar_lea.vmem %s1151_s1, %s628_s15  ;;  %v751_v31 = vpack.c.bf16 %v323_v30, %v322_v29  ;;  %v325_v33 = vld [vmem:[#allocation2 + $0x78] sm:$0xff]  ;;  %s282_s7 = scalar_lea.vmem %s1150_s0, %s628_s15  ;;  %v633_v45 = vld [vmem:[%s1154_s4] ss:$0 sm:$0xff] }
  0x3c   : > { %738 = vmatprep.subr.bf16.mxu1 %v912_v0  ;;  %v326_v20 = vld [vmem:[%s296_s23] sm:$0xff]  ;;  %v327_v24 = vld [vmem:[%s296_s23 + $0x8] sm:$0xff]  ;;  %v328_v28 = vld [vmem:[%s296_s23 + $0x10] sm:$0xff]  ;;  %v754_v34 = vpack.c.bf16 %v325_v33, %v324_v32  ;;  %s273_s11 = scalar_lea.vmem [#allocation5], %s756_s30  ;;  %p526_p9 = scmp.lt.s32.totalorder (%p1165_p6), %s525_s13, 3 }
  0x3d   : > { %v307_v35 = vld [vmem:[%s282_s7] sm:$0xff]  ;;  %v308_v36 = vld [vmem:[%s282_s7 + $0x8] sm:$0xff]  ;;  %v309_v37 = vld [vmem:[%s282_s7 + $0x10] sm:$0xff] }
  0x3e   : > { %731 = vmatpush3.bf16.msra.mxu0 %v730_v16 }
  0x3f   : > { %740 = vmatpush3.bf16.msra.mxu1 %v739_v15 }
  0x40   : > { %741 = vmatprep.subr.bf16.mxu1 %v912_v0 }
  0x41   : > { %677 = vmatmul.mubr.msk.f32.vlgmr.msra.gmra.mrb[0].mxu0 %vm333_vm1, %v326_v20 }
  0x42   : > { %679 = vmatprep.mubr.msk.f32.mxu0 %vm913_vm0, %v914_v1 }
  0x43   : > { %743 = vmatpush3.bf16.msra.mxu1 %v742_v19 }
  0x44   : > { %744 = vmatprep.subr.bf16.mxu1 %v912_v0 }
  0x45   : > { %680 = vmatmul.mubr.msk.f32.gmra.mrb[2].mxu0 %vm333_vm1, %v327_v24 }
  0x46   : > { %682 = vmatprep.mubr.msk.f32.mxu0 %vm913_vm0, %v914_v1 }
  0x47   : > { %746 = vmatpush3.bf16.msra.mxu1 %v745_v23 }
  0x48   : > { %747 = vmatprep.subr.bf16.mxu1 %v912_v0 }
  0x49   : > { %683 = vmatmul.mubr.msk.f32.gmra.mrb[4].mxu0 %vm333_vm1, %v328_v28 }
  0x4b   : > { %749 = vmatpush3.bf16.msra.mxu1 %v748_v27 }
  0x4c   : > { %750 = vmatprep.subr.bf16.mxu1 %v912_v0 }
  0x4f   : > { %752 = vmatpush3.bf16.msra.mxu1 %v751_v31 }
  0x50   : > { %753 = vmatprep.subr.bf16.mxu1 %v912_v0 }
  0x53   : > { %755 = vmatpush3.bf16.msra.mxu1 %v754_v34 }
  0x56   : > { %718 = vmatmul.mubr.f32.vlgmr.msra.gmra.mrb[0].mxu1 %v307_v35 }
  0x57   : > { %720 = vmatprep.mubr.msk.f32.mxu1 %vm913_vm0, %v914_v1 }
  0x5a   : > { %721 = vmatmul.mubr.f32.gmra.mrb[2].mxu1 %v308_v36 }
  0x5b   : > { %723 = vmatprep.mubr.msk.f32.mxu1 %vm913_vm0, %v914_v1 }
  0x5e   : > { %724 = vmatmul.mubr.f32.gmra.mrb[4].mxu1 %v309_v37 }
 0x114   : > { %v409_v38 = vpop.f32.mrb[0].mxu0 }
 0x115   : > { %v678_v39 = vpop.f32.mrb[1].mxu0 }
 0x118   : > { %v414_v40 = vpop.f32.mrb[2].mxu0 }
 0x119   : > { %v681_v41 = vpop.f32.mrb[3].mxu0 }
 0x11c   : > { %v419_v42 = vpop.f32.mrb[4].mxu0 }
 0x11d   : > { %v684_v43 = vpop.f32.mrb[5].mxu0 }
 0x129   : > { %v489_v44 = vpop.f32.mrb[0].mxu1 }
 0x12a   : > { %v490_v46 = vadd.f32 %v489_v44, %v409_v38  ;;  %v719_v47 = vpop.f32.mrb[1].mxu1 }
 0x12c   : > { %v510_v48 = vadd.f32 %v633_v45, %v490_v46 }
 0x12d   : > { %v494_v49 = vpop.f32.mrb[2].mxu1 }
 0x12e   : > { %513 = vst [vmem:[%s273_s11] sm:$0xff] %v510_v48  ;;  %v495_v50 = vadd.f32 %v494_v49, %v414_v40  ;;  %v722_v51 = vpop.f32.mrb[3].mxu1 }
 0x130   : > { %v511_v52 = vadd.f32 %v633_v45, %v495_v50  ;;  %523 = sbr.rel (!%p1165_p6) target bundleno = 339 (0x153), region = 48 }
 0x131   : > { %v499_v53 = vpop.f32.mrb[4].mxu1 }
 0x132   : > { %514 = vst [vmem:[%s273_s11 + $0x8] sm:$0xff] %v511_v52  ;;  %v500_v54 = vadd.f32 %v499_v53, %v419_v42  ;;  %v725_v55 = vpop.f32.mrb[5].mxu1 }
 0x134   : > { %v512_v56 = vadd.f32 %v633_v45, %v500_v54 }
 0x136   : > { %515 = vst [vmem:[%s273_s11 + $0x10] sm:$0xff] %v512_v56 }
 0x137   : > { %s1172_s13 = smov (!%p526_p9, %s525_s13), 3 }
 0x138   : > { %s1095_s14 = sshll.u32 %s1172_s13, 7 }
 0x139   : > { %s530_s15 = ssub.s32 384, %s1095_s14 }
 0x13a   : > { %531 = vsyncadd %s1090_s12, %s530_s15  ;;  %p635_p10 = scmp.ne.s32.totalorder %s1095_s14, 0  ;;  %s641_s16 = smul.u32 384, %s969_s22 }
 0x13b   : > { %s536_s17 = sshll.u32 %s273_s11, 4  ;;  %s915_s26 = smov [#allocation5]   ;;  %s1106_s17 = int_to_ptr.vmem [resolvable:$true] %s536_s17 }
 0x13c   : > { %s1104_s25 = scalar_lea.hbm %s1155_s5, %s641_s16  ;;  %s841_s6 = scalar_lea.vmem %s1106_s17, %s1095_s14 }
 0x13d   : > { %p842_p12 = scmp.ne.s32.totalorder %s1106_s17, %s841_s6  ;;  %s845_s7 = sshll.u32 %s915_s26, 4  ;;  %s846_s7 = int_to_ptr.vmem [resolvable:$false] %s845_s7 }
 0x13e   : > { %s847_s22 = scalar_lea.vmem %s846_s7, 768  ;;  %p848_p4 = scmp.lt.s32.totalorder %s1106_s17, %s846_s7 }
 0x13f   : > { %p843_p2 = pnand %p842_p12, %p635_p10  ;;  %p849_p7 = scmp.lt.s32.totalorder %s847_s22, %s841_s6 }
 0x141   : > { %p844_p3 = pneg %p843_p2  ;;  %p850_p8 = por %p849_p7, %p848_p4 }
 0x143   : > { %p851_p11 = pnand %p850_p8, %p844_p3 }
 0x145   : > { %854 = shalt.err (!%p851_p11)
}
 0x146   : > { %s855_s8 = scalar_lea.hbm %s1104_s25, %s1095_s14  ;;  %s859_s10 = scalar_lea.hbm %s1155_s5, 640 }
 0x147   : > { %p856_p13 = scmp.ne.s32.totalorder %s1104_s25, %s855_s8  ;;  %p860_p5 = scmp.lt.u32.totalorder %s1104_s25, %s1155_s5 }
 0x148   : > { %p861_p6 = scmp.lt.u32.totalorder %s859_s10, %s855_s8  ;;  %p863_p12 = scmp.lt.u32.totalorder %s855_s8, %s1104_s25 }
 0x149   : > { %p857_p1 = pnand %p856_p13, %p635_p10 }
 0x14a   : > { %p862_p9 = por %p861_p6, %p860_p5 }
 0x14b   : > { %p858_p0 = pneg %p857_p1 }
 0x14c   : > { %p864_p2 = por %p863_p12, %p862_p9 }
 0x14e   : > { %p865_p3 = pnand %p864_p2, %p858_p0 }
 0x150   : > { %868 = shalt.err (!%p865_p3)
}
 0x151   : > { %s916_s15 = smov 128   ;;  %s917_s16 = smov 8  }
 0x152   : > { %542 = dma.vmem_to_hbm [thread:$0]  (%p635_p10), %s1106_s17, %s1095_s14, %s1104_s25, %s1090_s12, %s916_s15, %s916_s15, %s917_s16  }
 0x153 PF: > { %p772_p4 = scmp.ge.s32.totalorder %s907_s21, 2  ;;  %s551_s23 = sand.u32 1, %s895_s18  }
 0x154   : > { %p1166_p7 = scmp.ne.s32.totalorder %s1159_s29, 0  ;;  %s552_s28 = scalar_lea.sflag [#allocation4], %s551_s23 }
 0x156   : > { %p767_p8 = pnand %p772_p4, %p1166_p7 }
 0x158   : > { %890 = dma.done.wait (!%p767_p8), %s552_s28, 384  }
 0x159   : > { %892 = vsyncadd (!%p767_p8), %s552_s28, 4294966912  ;;  %p16_p11 = scmp.ge.s32.totalorder %s973_s24, 4   ;;  %s1167_s18 = smov %s899_s19 }
 0x15a   : > { %s1168_s19 = smov %s903_s20  ;;  %s1169_s20 = smov %s984_s27 }
 0x15b   : > { %s1170_s21 = smov %s973_s24  ;;  %18 = sbr.rel (!%p16_p11) target bundleno = 4 (0x4), region = 83 }
 0x162   :  { %557 = vsyncpa [#allocation3], 1 }
 0x163   :  { %559 = vsyncpa [#allocation3 + $0x1], 1 }
 0x164   :  { %560 = vsyncpa [#allocation4], 1 }
 0x165   :  { %562 = vsyncpa [#allocation4 + $0x1], 1 }

</bundles_post_ra>
